<compile_context>
chip_gen: v5e
topology: v5e:2x2
jax: 0.10.0
libtpu: 0.0.40
codegen_flags: <defaults>
</compile_context>

<pallas_src>
import math

import jax
import jax.numpy as jnp
from jax.experimental import pallas as pl
from jax.experimental.pallas import tpu as pltpu

HIDDEN = 32          # args.hidden_size
MAX_TILE_B = 8192    # batch columns per grid step (sweepable; multiple of 256).
                     # Transposed blocks are tiny: x block 16x8192 f32 = 512 KiB,
                     # out block 8x8192 f32 = 256 KiB -> far under any VMEM limit.
SMALL_B_FULL = 512   # below this, a single block covers the whole batch.


def _round_up(x, m):
    return ((x + m - 1) // m) * m


def _make_baseline_kernel(D: int, H: int):
    """Feature-major fused 3-layer MLP.

    Refs:
      x_ref : (D, tile_b) f32   streamed block of states^T
      p_ref : (H, H+D+4)  f32   packed params, VMEM-resident across all steps
      o_ref : (1, tile_b) f32   state values (transposed, lane-dense)

    Packed-parameter column layout:
      [0     : H    ]  W2   (H, H)   (PyTorch (out, in) layout)
      [H     : H+D  ]  W1   (H, D)
      [H+D          ]  b1   (H,)
      [H+D+1        ]  b2   (H,)
      [H+D+2        ]  W3^T (H,)     (W3 is (1, H))
      [H+D+3        ]  b3   (row 0 only)
    """

    def kernel(x_ref, p_ref, out_ref):
        xT = x_ref[...]                             # (D, tile_b)

        w2 = p_ref[:, 0:H]                          # (H, H)
        w1 = p_ref[:, H:H + D]                      # (H, D)
        b1 = p_ref[:, H + D:H + D + 1]              # (H, 1)
        b2 = p_ref[:, H + D + 1:H + D + 2]          # (H, 1)
        w3 = p_ref[:, H + D + 2:H + D + 3]          # (H, 1)
        b3 = p_ref[0:1, H + D + 3:H + D + 4]        # (1, 1)

        # fc1 + relu: (H, D) @ (D, tile_b) -> (H, tile_b); N = tile_b fills all
        # MXU lanes, bias broadcasts along lanes.
        h1 = jnp.dot(w1, xT, preferred_element_type=jnp.float32)
        h1 = jnp.maximum(h1 + b1, 0.0)

        # fc2 + relu: (H, H) @ (H, tile_b) -> (H, tile_b)
        h2 = jnp.dot(w2, h1, preferred_element_type=jnp.float32)
        h2 = jnp.maximum(h2 + b2, 0.0)

        # fc3 + relu: per-lane reduce over the 32 sublanes (VPU mul + cheap
        # sublane reduce) -> (1, tile_b) lane-dense output row.
        v = jnp.sum(h2 * w3, axis=0, keepdims=True) + b3
        out_ref[...] = jnp.maximum(v, 0.0).astype(out_ref.dtype)

    return kernel


def _choose_tile_b(B, max_tile_b):
    if B <= SMALL_B_FULL:
        return B                      # one block == full (small) batch
    # >= 2 grid steps so both v7x TensorCores get work; multiple of 256 lanes.
    return min(max_tile_b, _round_up(pl.cdiv(B, 2), 256))


def baseline_forward(states, packed_params, *, max_tile_b=MAX_TILE_B):
    """states: (B, D) float32. packed_params: (H, H + D + 4) float32.

    Returns (B, 1) float32 state values.
    """
    B, D = states.shape
    H, C = packed_params.shape
    assert C == H + D + 4, f"packed params cols {C} != H + D + 4 = {H + D + 4}"

    # One extra pass over x in the wrapper buys lane-dense kernel blocks.
    xT = states.T                                     # (D, B)

    tile_b = _choose_tile_b(B, max_tile_b)
    grid = (pl.cdiv(B, tile_b),)

    kernel = _make_baseline_kernel(D, H)

    out_t = pl.pallas_call(
        kernel,
        out_shape=jax.ShapeDtypeStruct((1, B), jnp.float32),
        grid=grid,
        in_specs=[
            # streamed batch columns: new block per step -> pipelined HBM reads
            pl.BlockSpec((D, tile_b), lambda i: (0, i)),
            # packed params: constant block index -> fetched once, VMEM-resident
            pl.BlockSpec((H, C), lambda i: (0, 0)),
        ],
        out_specs=pl.BlockSpec((1, tile_b), lambda i: (0, i)),
        compiler_params=pltpu.CompilerParams(
            dimension_semantics=("parallel",)),
    )(xT, packed_params)

    return out_t.reshape(B, 1)


def init_baseline_params(key, dim_states, hidden=HIDDEN):
    """Deterministic init mirroring torch.nn.Linear default
    (U[-1/sqrt(fan_in), 1/sqrt(fan_in)]). Weights stored as (in, out)."""
    keys = jax.random.split(key, 6)

    def linear(kw, kb, fan_in, fan_out):
        bound = 1.0 / math.sqrt(fan_in)
        w = jax.random.uniform(kw, (fan_in, fan_out), jnp.float32, -bound, bound)
        b = jax.random.uniform(kb, (1, fan_out), jnp.float32, -bound, bound)
        return w, b

    w1, b1 = linear(keys[0], keys[1], dim_states, hidden)
    w2, b2 = linear(keys[2], keys[3], hidden, hidden)
    w3, b3 = linear(keys[4], keys[5], hidden, 1)
    return (w1, b1, w2, b2, w3, b3)


def pack_baseline_params(params):
    """Host-side re-layout for the transposed kernel: one (H, H+D+4) buffer."""
    w1, b1, w2, b2, w3, b3 = params       # w1:(D,H) b1:(1,H) w2:(H,H) w3:(H,1) b3:(1,1)
    D, H = w1.shape
    b3_col = jnp.zeros((H, 1), jnp.float32).at[0, 0].set(b3[0, 0])
    return jnp.concatenate(
        [w2.T, w1.T, b1.T, b2.T, w3, b3_col], axis=1).astype(jnp.float32)


def baseline_reference(states, params):
    """Pure-JAX reference of the PyTorch forward."""
    w1, b1, w2, b2, w3, b3 = params
    x = jnp.maximum(states @ w1 + b1, 0.0)
    x = jnp.maximum(x @ w2 + b2, 0.0)
    # Note: the original module really does apply relu after fc3.
    return jnp.maximum(x @ w3 + b3, 0.0)


if __name__ == "__main__":
    key = jax.random.PRNGKey(0)
    k_param, k_states, k_big = jax.random.split(key, 3)

    batch = 8
    dim_states = 11  # Hopper-v2 observation dim

    params = init_baseline_params(k_param, dim_states)
    packed = pack_baseline_params(params)
    states = jax.random.normal(k_states, (batch, dim_states), jnp.float32)

    values = baseline_forward(states, packed)
    values = jax.block_until_ready(values)

    ref = baseline_reference(states, params)
    assert values.shape == (batch, 1)
    assert jnp.allclose(values, ref, atol=1e-5, rtol=1e-5), (
        f"max abs diff {jnp.max(jnp.abs(values - ref))}")

    # Also exercise the multi-step tiled path (partial last block, 2 grid steps).
    big_b = 5000  # args.batch_size
    big_states = jax.random.normal(k_big, (big_b, dim_states), jnp.float32)
    big_vals = jax.block_until_ready(baseline_forward(big_states, packed))
    big_ref = baseline_reference(big_states, params)
    assert big_vals.shape == (big_b, 1)
    assert jnp.allclose(big_vals, big_ref, atol=1e-4, rtol=1e-4), (
        f"max abs diff {jnp.max(jnp.abs(big_vals - big_ref))}")

    print("KERNEL_OK")
</pallas_src>

<mosaic_0001>
module attributes {stable_mosaic.version = 11 : i64} {
  func.func @kernel(%arg0: i32, %arg1: memref<11x8xf32, #tpu.memory_space<vmem>>, %arg2: memref<32x47xf32, #tpu.memory_space<vmem>>, %arg3: memref<1x8xf32, #tpu.memory_space<vmem>>) attributes {dimension_semantics = [#tpu.dimension_semantics<parallel>], iteration_bounds = array<i64: 1>, scalar_prefetch = 0 : i64, scratch_operands = 0 : i64, tpu.core_type = #tpu.core_type<tc>, window_params = [{transform_indices = @transform_0, window_bounds = array<i64: 11, 8>}, {pipeline_mode = #tpu.pipeline_mode<synchronous>, transform_indices = @transform_1, window_bounds = array<i64: 32, 47>}, {transform_indices = @transform_2, window_bounds = array<i64: 1, 8>}]} {
    %c0 = arith.constant 0 : index
    %c0_0 = arith.constant 0 : index
    %0 = vector.load %arg1[%c0, %c0_0] : memref<11x8xf32, #tpu.memory_space<vmem>>, vector<11x8xf32>
    %c0_1 = arith.constant 0 : index
    %c0_2 = arith.constant 0 : index
    %1 = vector.load %arg2[%c0_1, %c0_2] : memref<32x47xf32, #tpu.memory_space<vmem>>, vector<32x32xf32>
    %c0_3 = arith.constant 0 : index
    %c32 = arith.constant 32 : index
    %2 = vector.load %arg2[%c0_3, %c32] : memref<32x47xf32, #tpu.memory_space<vmem>>, vector<32x11xf32>
    %c0_4 = arith.constant 0 : index
    %c43 = arith.constant 43 : index
    %3 = vector.load %arg2[%c0_4, %c43] : memref<32x47xf32, #tpu.memory_space<vmem>>, vector<32x1xf32>
    %c0_5 = arith.constant 0 : index
    %c44 = arith.constant 44 : index
    %4 = vector.load %arg2[%c0_5, %c44] : memref<32x47xf32, #tpu.memory_space<vmem>>, vector<32x1xf32>
    %c0_6 = arith.constant 0 : index
    %c45 = arith.constant 45 : index
    %5 = vector.load %arg2[%c0_6, %c45] : memref<32x47xf32, #tpu.memory_space<vmem>>, vector<32x1xf32>
    %c0_7 = arith.constant 0 : index
    %c46 = arith.constant 46 : index
    %6 = vector.load %arg2[%c0_7, %c46] : memref<32x47xf32, #tpu.memory_space<vmem>>, vector<1x1xf32>
    %cst = arith.constant dense<0.000000e+00> : vector<32x8xf32>
    %7 = tpu.matmul %2, %0, %cst {dimension_numbers = #tpu.dot_dimension_numbers<[1], [0], [0], [1], [0, 0, 1, 1], [], []>} : vector<32x11xf32>, vector<11x8xf32>, vector<32x8xf32> -> vector<32x8xf32>
    %8 = vector.broadcast %3 : vector<32x1xf32> to vector<32x8xf32>
    %9 = arith.addf %7, %8 : vector<32x8xf32>
    %cst_8 = arith.constant 0.000000e+00 : f32
    %10 = vector.broadcast %cst_8 : f32 to vector<32x8xf32>
    %11 = arith.maximumf %9, %10 : vector<32x8xf32>
    %cst_9 = arith.constant dense<0.000000e+00> : vector<32x8xf32>
    %12 = tpu.matmul %1, %11, %cst_9 {dimension_numbers = #tpu.dot_dimension_numbers<[1], [0], [0], [1], [0, 0, 1, 1], [], []>} : vector<32x32xf32>, vector<32x8xf32>, vector<32x8xf32> -> vector<32x8xf32>
    %13 = vector.broadcast %4 : vector<32x1xf32> to vector<32x8xf32>
    %14 = arith.addf %12, %13 : vector<32x8xf32>
    %cst_10 = arith.constant 0.000000e+00 : f32
    %15 = vector.broadcast %cst_10 : f32 to vector<32x8xf32>
    %16 = arith.maximumf %14, %15 : vector<32x8xf32>
    %17 = vector.broadcast %5 : vector<32x1xf32> to vector<32x8xf32>
    %18 = arith.mulf %16, %17 : vector<32x8xf32>
    %cst_11 = arith.constant dense<0.000000e+00> : vector<8xf32>
    %19 = vector.multi_reduction <add>, %18, %cst_11 [0] : vector<32x8xf32> to vector<8xf32>
    %20 = vector.shape_cast %19 : vector<8xf32> to vector<1x8xf32>
    %21 = vector.broadcast %6 : vector<1x1xf32> to vector<1x8xf32>
    %22 = arith.addf %20, %21 : vector<1x8xf32>
    %cst_12 = arith.constant 0.000000e+00 : f32
    %23 = vector.broadcast %cst_12 : f32 to vector<1x8xf32>
    %24 = arith.maximumf %22, %23 : vector<1x8xf32>
    %c0_13 = arith.constant 0 : index
    %c0_14 = arith.constant 0 : index
    %25 = vector.load %arg3[%c0_13, %c0_14] : memref<1x8xf32, #tpu.memory_space<vmem>>, vector<1x8xf32>
    tpu.vector_store %arg3[%c0_13, %c0_14], %24 {strides = array<i32>} : memref<1x8xf32, #tpu.memory_space<vmem>>, vector<1x8xf32>,
    return
  }
  func.func @transform_0(%arg0: i32) -> (i32, i32) {
    %c0_i32 = arith.constant 0 : i32
    %c0_i32_0 = arith.constant 0 : i32
    return %c0_i32, %arg0 : i32, i32
  }
  func.func @transform_1(%arg0: i32) -> (i32, i32) {
    %c0_i32 = arith.constant 0 : i32
    %c0_i32_0 = arith.constant 0 : i32
    %c0_i32_1 = arith.constant 0 : i32
    return %c0_i32, %c0_i32_0 : i32, i32
  }
  func.func @transform_2(%arg0: i32) -> (i32, i32) {
    %c0_i32 = arith.constant 0 : i32
    %c0_i32_0 = arith.constant 0 : i32
    return %c0_i32, %arg0 : i32, i32
  }
}

</mosaic_0001>

<bundles_post_ra>
// kernel: tpu_custom_call.1
= control target key start
LH: loop header
LB: loop body
LE: loop exit
PB: predicated region body
PF: predicated region fallthrough
CT: control target
= control target key end

     0   :  { %7 = vsyncpa [#allocation3], 0  ;;  %s376_s0 = inlined_call_operand.vmem [shape: f32[11,8], index: 0, kind: input, shape index: {}]   ;;  %s377_s1 = inlined_call_operand.hbm [shape: f32[32,47], index: 1, kind: input, shape index: {}]   ;;  %s378_s2 = inlined_call_operand.hbm [shape: f32[1,8], index: 2, kind: output, shape index: {}]  }
   0x1   :  { %8 = vsyncpa [#allocation4], 0  ;;  %s15_s11 = sshll.u32 %s377_s1, 4  ;;  %s312_s12 = smov [#allocation2]   ;;  %s16_s11 = int_to_ptr.hbm [resolvable:$true] %s15_s11 }
   0x2   :  { %s17_s13 = sshll.u32 %s312_s12, 4  ;;  %s313_s14 = smov 128   ;;  %s18_s13 = int_to_ptr.vmem [resolvable:$true] %s17_s13 }
   0x3   :  { %s314_s15 = smov 8  }
   0x4   :  { %23 = dma.hbm_to_vmem [thread:$0]  %s16_s11, 512, %s18_s13, [#allocation3], %s313_s14, %s313_s14, %s314_s15  }
   0x5   :  { %308 = dma.done.wait [#allocation3], 512  }
   0x6   :  { %309 = vsyncadd [#allocation3], 4294966784  ;;  %vm72_vm0 = vcmask 1042432   ;;  %v339_v0 = vld [vmem:[#allocation2 + $0x8] sm:$0xff]  ;;  %v341_v1 = vld [vmem:[#allocation2 + $0x18] sm:$0xff]  ;;  %s315_s16 = smov 96  }
   0x7   :  { %57 = vrot.lane.b32.xlu0 %v339_v0, %s315_s16  ;;  %61 = vrot.lane.b32.xlu1 %v341_v1, %s315_s16  ;;  %v29_v2 = vld [vmem:[%s376_s0 + $0x8] sm:$0x7]  ;;  %v348_v3 = vld [vmem:[#allocation2 + $0x10] sm:$0xff]  ;;  %v350_v4 = vld [vmem:[#allocation2] sm:$0xff]  ;;  %v316_v6 = vmov 43   ;;  %vm63_vm1 = vcmask 89088  }
   0x8   :  { %236 = vmatpush.msk.msra.mxu3 %vm72_vm0, %v29_v2  ;;  %227 = vmatpush.msk.msra.mxu0 %vm72_vm0, %v29_v2  ;;  %v28_v5 = vld [vmem:[%s376_s0] sm:$0xff]  ;;  %v317_v11 = vmov 44   ;;  %v318_v14 = vmov 45   ;;  %v319_v17 = vmov 46   ;;  %vm125_vm2 = vcmask 261120   ;;  %s320_s0 = smov [#allocation5]  }
   0x9   :  { %252 = vset.pattern.permute.xlu0 %v316_v6  ;;  %253 = vset.pattern.permute.xlu1 %v316_v6  ;;  %v34_v15 = vld [vmem:[#allocation2] sm:$0x1]  ;;  %vm187_vm3 = vcmask 64512   ;;  %s215_s20 = sshll.u32 %s320_s0, 4  ;;  %s217_s23 = sshll.u32 %s378_s2, 4  ;;  %vm208_vm4 = vcmask 57344   ;;  %s216_s20 = int_to_ptr.vmem [resolvable:$true] %s215_s20  ;;  %s218_s23 = int_to_ptr.hbm [resolvable:$true] %s217_s23 }
   0xa   :  { %237 = vmatpush.msra.mxu3 %v28_v5  ;;  %91 = vmatpush.msra.mxu0 %v28_v5 }
   0xb   :  { %251 = vset.pattern.permute.xlu2 %v316_v6 }
   0xc   :  { %52 = vperm.xlu2 %251, %v341_v1  }
   0xf   :  { %59 = vrot.lane.b32.xlu0 %v348_v3, %s315_s16  ;;  %55 = vrot.lane.b32.xlu1 %v350_v4, %s315_s16 }
  0x14   :  { %47 = vperm.xlu2 %251, %v348_v3  }
  0x17   :  { %42 = vperm.xlu0 %252, %v339_v0   ;;  %37 = vperm.xlu1 %253, %v350_v4  }
  0x1c   :  { %254 = vset.pattern.permute.xlu2 %v317_v11 }
  0x1d   :  { %110 = vperm.xlu2 %254, %v350_v4  }
  0x1f   :  { %255 = vset.pattern.permute.xlu1 %v317_v11  ;;  %256 = vset.pattern.permute.xlu0 %v317_v11 }
  0x20   :  { %114 = vperm.xlu1 %255, %v339_v0   ;;  %122 = vperm.xlu0 %256, %v341_v1  }
  0x25   :  { %118 = vperm.xlu2 %254, %v348_v3  }
  0x28   :  { %257 = vset.pattern.permute.xlu1 %v318_v14  ;;  %259 = vset.pattern.permute.xlu0 %v319_v17 }
  0x29   :  { %168 = vperm.xlu1 %257, %v350_v4   ;;  %203 = vperm.xlu0 %259, %v34_v15  }
  0x2d   :  { %258 = vset.pattern.permute.xlu2 %v318_v14 }
  0x2e   :  { %172 = vperm.xlu2 %258, %v339_v0  }
  0x31   :  { %176 = vperm.xlu1 %257, %v348_v3  }
  0x36   :  { %180 = vperm.xlu2 %258, %v341_v1  }
  0x66   :  { %v53_v13 = vpop.permute.xlu2 %52 }
  0x6e   :  { %v48_v18 = vpop.permute.xlu2 %47 }
  0x77   :  { %v111_v31 = vpop.permute.xlu2 %110 }
  0x79   :  { %v58_v7 = vpop.permute.xlu0 %57  ;;  %v62_v8 = vpop.permute.xlu1 %61 }
  0x7a   :  { %229 = vmatmul.msk.f32.vlgmr.msra.gmra.mxu3 %vm63_vm1, %v58_v7 }
  0x7f   :  { %v119_v33 = vpop.permute.xlu2 %118 }
  0x81   :  { %v60_v9 = vpop.permute.xlu0 %59  ;;  %v56_v10 = vpop.permute.xlu1 %55 }
  0x82   :  { %230 = vmatmul.msk.f32.gmra.mxu3 %vm63_vm1, %v60_v9  ;;  %228 = vmatmul.msk.f32.vlgmr.msra.gmra.mxu0 %vm63_vm1, %v56_v10 }
  0x88   :  { %v173_v40 = vpop.permute.xlu2 %172 }
  0x89   :  { %v43_v19 = vpop.permute.xlu0 %42  ;;  %v38_v20 = vpop.permute.xlu1 %37 }
  0x8a   :  { %231 = vmatmul.msk.f32.gmra.mxu3 %vm63_vm1, %v62_v8 }
  0x90   :  { %v181_v56 = vpop.permute.xlu2 %180 }
  0x92   :  { %v115_v32 = vpop.permute.xlu1 %114  ;;  %v123_v46 = vpop.permute.xlu0 %122 }
  0x9b   :  { %v169_v36 = vpop.permute.xlu1 %168 }
  0xa3   :  { %v177_v48 = vpop.permute.xlu1 %176 }
  0xfd   :  { %v96_v12 = vpop.f32.mrf.mxu3 }
  0xfe   :  { %v97_v25 = vadd.f32 %v96_v12, %v43_v19 }
  0xff   :  { %v93_v22 = vpop.f32.mrf.mxu0 }
 0x100   :  { %v94_v27 = vadd.f32 %v93_v22, %v38_v20  ;;  %v106_v29 = vmax.f32 %v97_v25, 0.0 }
 0x102   :  { %v105_v30 = vmax.f32 %v94_v27, 0.0 }
 0x105   :  { %v99_v16 = vpop.f32.mrf.mxu3 }
 0x106   :  { %v100_v23 = vadd.f32 %v99_v16, %v48_v18 }
 0x108   :  { %v107_v28 = vmax.f32 %v100_v23, 0.0 }
 0x10d   :  { %v102_v21 = vpop.f32.mrf.mxu3 }
 0x10e   :  { %v103_v24 = vadd.f32 %v102_v21, %v53_v13 }
 0x110   :  { %v108_v26 = vmax.f32 %v103_v24, 0.0 }
 0x112   :  { %146 = vmatpush.msra.mxu1 %v108_v26  ;;  %238 = vmatpush.msra.mxu2 %v108_v26 }
 0x114   :  { %147 = vmatpush.msra.mxu1 %v107_v28  ;;  %239 = vmatpush.msra.mxu2 %v107_v28 }
 0x116   :  { %148 = vmatpush.msra.mxu1 %v106_v29  ;;  %240 = vmatpush.msra.mxu2 %v106_v29 }
 0x118   :  { %149 = vmatpush.msra.mxu1 %v105_v30  ;;  %241 = vmatpush.msra.mxu2 %v105_v30 }
 0x119   :  { %232 = vmatmul.msk.f32.vlgmr.msra.gmra.mxu1 %vm125_vm2, %v350_v4  ;;  %234 = vmatmul.msk.f32.vlgmr.msra.gmra.mxu2 %vm125_vm2, %v348_v3  ;;  %v204_v3 = vpop.permute.xlu0 %203 }
 0x121   :  { %233 = vmatmul.msk.f32.gmra.mxu1 %vm125_vm2, %v339_v0  ;;  %235 = vmatmul.msk.f32.gmra.mxu2 %vm125_vm2, %v341_v1 }
 0x196   :  { %v151_v34 = vpop.f32.mrf.mxu1 }
 0x197   :  { %v152_v35 = vadd.f32 %v151_v34, %v111_v31 }
 0x199   :  { %v163_v38 = vmax.f32 %v152_v35, 0.0 }
 0x19b   :  { %v183_v43 = vmul.f32 %v169_v36, %v163_v38 }
 0x19c   :  { %v157_v37 = vpop.f32.mrf.mxu2 }
 0x19d   :  { %v158_v39 = vadd.f32 %v157_v37, %v119_v33  ;;  %v188_v50 = vsel %vm187_vm3, %v183_v43, 0.0 }
 0x19e   :  { %v154_v41 = vpop.f32.mrf.mxu1 }
 0x19f   :  { %v155_v42 = vadd.f32 %v154_v41, %v115_v32  ;;  %v165_v44 = vmax.f32 %v158_v39, 0.0 }
 0x1a1   :  { %v164_v45 = vmax.f32 %v155_v42, 0.0  ;;  %v185_v51 = vmul.f32 %v177_v48, %v165_v44 }
 0x1a3   :  { %v184_v47 = vmul.f32 %v173_v40, %v164_v45  ;;  %v191_v57 = vsel %vm187_vm3, %v185_v51, 0.0 }
 0x1a4   :  { %v160_v49 = vpop.f32.mrf.mxu2 }
 0x1a5   :  { %v189_v52 = vsel %vm187_vm3, %v184_v47, 0.0  ;;  %v161_v53 = vadd.f32 %v160_v49, %v123_v46 }
 0x1a6   :  { %v190_v54 = vadd.f32 %v189_v52, %v188_v50 }
 0x1a7   :  { %v166_v55 = vmax.f32 %v161_v53, 0.0 }
 0x1a8   :  { %v192_v59 = vadd.f32 %v191_v57, %v190_v54 }
 0x1a9   :  { %v186_v58 = vmul.f32 %v181_v56, %v166_v55 }
 0x1ab   :  { %v193_v60 = vsel %vm187_vm3, %v186_v58, 0.0 }
 0x1ac   :  { %v194_v61 = vadd.f32 %v193_v60, %v192_v59 }
 0x1ae   :  { %v195_v62 = vrot.slane %v194_v61, 4 }
 0x1b0   :  { %v196_v63 = vadd.f32 %v195_v62, %v194_v61 }
 0x1b2   :  { %v197_v0 = vrot.slane %v196_v63, 2 }
 0x1b4   :  { %v198_v1 = vadd.f32 %v197_v0, %v196_v63 }
 0x1b6   :  { %v199_v2 = vrot.slane %v198_v1, 1 }
 0x1b8   :  { %v200_v4 = vadd.f32 %v199_v2, %v198_v1 }
 0x1ba   :  { %v206_v5 = vadd.f32 %v204_v3, %v200_v4 }
 0x1bc   :  { %v207_v6 = vmax.f32 %v206_v5, 0.0 }
 0x1be   :  { %209 = vst.msk [vmem:[#allocation5] sm:$0x1] %vm208_vm4, %v207_v6 }
 0x1bf   :  { %220 = dma.vmem_to_hbm [thread:$0]  %s216_s20, 16, %s218_s23, [#allocation4]  }
 0x1c0   :  { %310 = dma.done.wait [#allocation4], 16  }
 0x1c1   :  { %311 = vsyncadd [#allocation4], 4294967280 }
 0x1c2   :  { %225 = vsyncpa [#allocation3], 1 }
 0x1c3   :  { %226 = vsyncpa [#allocation4], 1 }

</bundles_post_ra>
